<compile_context>
chip_gen: v7x
topology: tpu7x:2x2x1
jax: 0.10.0
libtpu: 0.0.40
codegen_flags: <defaults>
</compile_context>

<pallas_src>
import jax
import jax.numpy as jnp
from jax.experimental import pallas as pl
from jax.experimental.pallas import tpu as pltpu


def _round_up(x, m):
    return (x + m - 1) // m * m


def _predictor_kernel(x_ref, w_ref, b_ref, y_ref):
    """Single fused MXU matmul for both heads; fp32 accumulate + fp32 bias."""
    y_ref[...] = (
        jnp.dot(x_ref[...], w_ref[...], preferred_element_type=jnp.float32)
        + b_ref[...]
    ).astype(y_ref.dtype)


def fast_rcnn_predictor(x, w_cls, b_cls, w_box, b_box,
                        *, compute_dtype=jnp.bfloat16, tile_m=512):
    """
    x      : (N, C) or (N, C, 1, 1) float32
    w_cls  : (C, num_classes)       float32  (transposed vs torch nn.Linear.weight)
    b_cls  : (num_classes,)         float32
    w_box  : (C, num_classes * 4)   float32
    b_box  : (num_classes * 4,)     float32
    returns (scores (N, num_classes), bbox_deltas (N, num_classes*4)), fp32
    """
    if x.ndim == 4:
        assert x.shape[2] == 1 and x.shape[3] == 1, "expected (N, C, 1, 1)"
    x2 = x.reshape(x.shape[0], -1)

    N, C = x2.shape
    NC = w_cls.shape[1]
    NB = w_box.shape[1]
    NOUT = NC + NB
    # Lane-dense fused output width (multiple of 128 -> unmasked vst; 455 -> 512).
    NOUT_pad = _round_up(NOUT, 128)

    # Row (sublane/M) padding so every grid tile is full-sized.
    sub = 16 if jnp.dtype(compute_dtype) == jnp.dtype(jnp.bfloat16) else 8
    if N <= tile_m:
        n_pad = max(_round_up(N, sub), sub)
        tm = n_pad                    # single full-extent tile over rows
    else:
        n_pad = _round_up(N, tile_m)
        tm = tile_m
    grid_m = n_pad // tm

    # Fuse the two heads; zero-fill the padded columns (sliced away below).
    w_fused = jnp.concatenate([w_cls, w_box], axis=1)
    w_fused = jnp.pad(w_fused, ((0, 0), (0, NOUT_pad - NOUT))).astype(compute_dtype)
    b_fused = jnp.pad(jnp.concatenate([b_cls, b_box]), (0, NOUT_pad - NOUT))
    b_fused = b_fused.reshape(1, NOUT_pad).astype(jnp.float32)

    x_p = jnp.pad(x2, ((0, n_pad - N), (0, 0))).astype(compute_dtype)

    in_bytes = jnp.dtype(compute_dtype).itemsize
    cost = pl.CostEstimate(
        flops=2 * n_pad * C * NOUT_pad,
        transcendentals=0,
        bytes_accessed=(n_pad * C * in_bytes            # x
                        + C * NOUT_pad * in_bytes       # fused weights
                        + NOUT_pad * 4                  # fused bias
                        + n_pad * NOUT_pad * 4),        # fused output
    )

    y = pl.pallas_call(
        _predictor_kernel,
        out_shape=jax.ShapeDtypeStruct((n_pad, NOUT_pad), jnp.float32),
        grid=(grid_m,),
        in_specs=[
            pl.BlockSpec((tm, C), lambda i: (i, 0)),         # x: pipelined over N
            pl.BlockSpec((C, NOUT_pad), lambda i: (0, 0)),   # fused W: resident
            pl.BlockSpec((1, NOUT_pad), lambda i: (0, 0)),   # fused bias: resident
        ],
        out_specs=pl.BlockSpec((tm, NOUT_pad), lambda i: (i, 0)),
        compiler_params=pltpu.CompilerParams(
            dimension_semantics=("parallel",)),
        cost_estimate=cost,
    )(x_p, w_fused, b_fused)

    scores = y[:N, :NC]
    bbox_deltas = y[:N, NC:NOUT]
    return scores, bbox_deltas


if __name__ == "__main__":
    # Small, module-consistent shapes: ROI features after pooling are (N, C, 1, 1).
    N = 2            # number of ROIs / batch rows
    C = 32           # in_channels
    NUM_CLASSES = 8  # including background

    key = jax.random.PRNGKey(0)
    k_x, k_wc, k_bc, k_wb, k_bb = jax.random.split(key, 5)

    x = jax.random.normal(k_x, (N, C, 1, 1), dtype=jnp.float32)

    # Deterministic synthetic parameters (nn.Linear shapes, stored as (in, out)).
    w_cls = jax.random.normal(k_wc, (C, NUM_CLASSES), dtype=jnp.float32) * 0.02
    b_cls = jax.random.normal(k_bc, (NUM_CLASSES,), dtype=jnp.float32) * 0.02
    w_box = jax.random.normal(k_wb, (C, NUM_CLASSES * 4), dtype=jnp.float32) * 0.02
    b_box = jax.random.normal(k_bb, (NUM_CLASSES * 4,), dtype=jnp.float32) * 0.02

    scores, bbox_deltas = fast_rcnn_predictor(x, w_cls, b_cls, w_box, b_box)
    jax.block_until_ready((scores, bbox_deltas))

    assert scores.shape == (N, NUM_CLASSES)
    assert bbox_deltas.shape == (N, NUM_CLASSES * 4)

    # Tight check against a reference that reproduces the kernel's bf16-in /
    # fp32-accumulate arithmetic exactly.
    x2 = x.reshape(N, -1)
    xb = x2.astype(jnp.bfloat16).astype(jnp.float32)
    wcb = w_cls.astype(jnp.bfloat16).astype(jnp.float32)
    wbb = w_box.astype(jnp.bfloat16).astype(jnp.float32)
    ref_scores_bf16 = xb @ wcb + b_cls
    ref_bbox_bf16 = xb @ wbb + b_box
    assert jnp.allclose(scores, ref_scores_bf16, atol=1e-4)
    assert jnp.allclose(bbox_deltas, ref_bbox_bf16, atol=1e-4)

    # Loose check against the pure fp32 module semantics.
    ref_scores = x2 @ w_cls + b_cls
    ref_bbox = x2 @ w_box + b_box
    assert jnp.allclose(scores, ref_scores, atol=2e-2)
    assert jnp.allclose(bbox_deltas, ref_bbox, atol=2e-2)

    print("KERNEL_OK")
</pallas_src>

<mosaic_0001>
module attributes {stable_mosaic.version = 11 : i64} {
  func.func @_predictor_kernel(%arg0: i32, %arg1: memref<16x32xbf16, #tpu.memory_space<vmem>>, %arg2: memref<32x128xbf16, #tpu.memory_space<vmem>>, %arg3: memref<1x128xf32, #tpu.memory_space<vmem>>, %arg4: memref<16x128xf32, #tpu.memory_space<vmem>>) attributes {dimension_semantics = [#tpu.dimension_semantics<parallel>], iteration_bounds = array<i64: 1>, scalar_prefetch = 0 : i64, scratch_operands = 0 : i64, tpu.core_type = #tpu.core_type<tc>, window_params = [{transform_indices = @transform_0, window_bounds = array<i64: 16, 32>}, {pipeline_mode = #tpu.pipeline_mode<synchronous>, transform_indices = @transform_1, window_bounds = array<i64: 32, 128>}, {pipeline_mode = #tpu.pipeline_mode<synchronous>, transform_indices = @transform_2, window_bounds = array<i64: 1, 128>}, {transform_indices = @transform_3, window_bounds = array<i64: 16, 128>}]} {
    %c0 = arith.constant 0 : index
    %c0_0 = arith.constant 0 : index
    %0 = vector.load %arg1[%c0, %c0_0] : memref<16x32xbf16, #tpu.memory_space<vmem>>, vector<16x32xbf16>
    %c0_1 = arith.constant 0 : index
    %c0_2 = arith.constant 0 : index
    %1 = vector.load %arg2[%c0_1, %c0_2] : memref<32x128xbf16, #tpu.memory_space<vmem>>, vector<32x128xbf16>
    %cst = arith.constant dense<0.000000e+00> : vector<16x128xf32>
    %2 = tpu.matmul %0, %1, %cst {dimension_numbers = #tpu.dot_dimension_numbers<[1], [0], [0], [1], [0, 0, 1, 1], [], []>} : vector<16x32xbf16>, vector<32x128xbf16>, vector<16x128xf32> -> vector<16x128xf32>
    %c0_3 = arith.constant 0 : index
    %c0_4 = arith.constant 0 : index
    %3 = vector.load %arg3[%c0_3, %c0_4] : memref<1x128xf32, #tpu.memory_space<vmem>>, vector<1x128xf32>
    %4 = vector.broadcast %3 : vector<1x128xf32> to vector<16x128xf32>
    %5 = arith.addf %2, %4 : vector<16x128xf32>
    %c0_5 = arith.constant 0 : index
    %c0_6 = arith.constant 0 : index
    %6 = vector.load %arg4[%c0_5, %c0_6] : memref<16x128xf32, #tpu.memory_space<vmem>>, vector<16x128xf32>
    tpu.vector_store %arg4[%c0_5, %c0_6], %5 {strides = array<i32>} : memref<16x128xf32, #tpu.memory_space<vmem>>, vector<16x128xf32>,
    return
  }
  func.func @transform_0(%arg0: i32) -> (i32, i32) {
    %c0_i32 = arith.constant 0 : i32
    %c0_i32_0 = arith.constant 0 : i32
    return %arg0, %c0_i32 : i32, i32
  }
  func.func @transform_1(%arg0: i32) -> (i32, i32) {
    %c0_i32 = arith.constant 0 : i32
    %c0_i32_0 = arith.constant 0 : i32
    %c0_i32_1 = arith.constant 0 : i32
    return %c0_i32, %c0_i32_0 : i32, i32
  }
  func.func @transform_2(%arg0: i32) -> (i32, i32) {
    %c0_i32 = arith.constant 0 : i32
    %c0_i32_0 = arith.constant 0 : i32
    %c0_i32_1 = arith.constant 0 : i32
    return %c0_i32, %c0_i32_0 : i32, i32
  }
  func.func @transform_3(%arg0: i32) -> (i32, i32) {
    %c0_i32 = arith.constant 0 : i32
    %c0_i32_0 = arith.constant 0 : i32
    return %arg0, %c0_i32 : i32, i32
  }
}

</mosaic_0001>

<bundles_post_ra>
// kernel: tpu_custom_call.1
= control target key start
LH: loop header
LB: loop body
LE: loop exit
PB: predicated region body
PF: predicated region fallthrough
CT: control target
= control target key end

     0   :  { %8 = vsyncpa [#allocation3], 0  ;;  %s307_s0 = inlined_call_operand.hbm [shape: bf16[16,32], index: 0, kind: input, shape index: {}]   ;;  %s308_s1 = inlined_call_operand.hbm [shape: bf16[32,128], index: 1, kind: input, shape index: {}]   ;;  %s309_s2 = inlined_call_operand.vmem [shape: f32[1,128], index: 2, kind: input, shape index: {}]   ;;  %s310_s3 = inlined_call_operand.hbm [shape: f32[16,128], index: 3, kind: output, shape index: {}]  }
   0x1   :  { %9 = vsyncpa [#allocation6], 0 }
   0x2   :  { %10 = vsyncpa [#allocation4], 0  ;;  %s239_s12 = smov [#allocation2]   ;;  %s167_s16 = scalar_lea.hbm %s307_s0, 128 }
   0x3   :  { %s16_s13 = sshll.u32 %s239_s12, 4  ;;  %p168_p0 = scmp.ne.s32.totalorder %s307_s0, %s167_s16  ;;  %s17_s13 = int_to_ptr.vmem [resolvable:$true] %s16_s13 }
   0x4   :  { %p171_p1 = scmp.lt.u32.totalorder %s167_s16, %s307_s0 }
   0x6   :  { %p173_p2 = pnand %p171_p1, %p168_p0 }
   0x8   :  { %176 = shalt.err (!%p173_p2)
}
   0x9   :  { %s177_s21 = scalar_lea.vmem %s17_s13, 128  ;;  %p182_p4 = scmp.lt.s32.totalorder %s17_s13, %s17_s13 }
   0xa   :  { %p178_p3 = scmp.ne.s32.totalorder %s17_s13, %s177_s21  ;;  %p183_p5 = scmp.lt.s32.totalorder %s177_s21, %s177_s21 }
   0xc   :  { %p184_p6 = por %p183_p5, %p182_p4 }
   0xe   :  { %p185_p7 = pnand %p184_p6, %p178_p3 }
  0x10   :  { %188 = shalt.err (!%p185_p7)
}
  0x11   :  { %s240_s22 = smov 64   ;;  %s241_s23 = smov 4  }
  0x12   :  { %22 = dma.hbm_to_vmem [thread:$0]  %s307_s0, 128, %s17_s13, [#allocation3], %s240_s22, %s240_s22, %s241_s23  }
  0x13   :  { %s242_s26 = smov [#allocation5]   ;;  %s189_s30 = scalar_lea.hbm %s308_s1, 256 }
  0x14   :  { %s28_s27 = sshll.u32 %s242_s26, 4  ;;  %p190_p8 = scmp.ne.s32.totalorder %s308_s1, %s189_s30  ;;  %s29_s27 = int_to_ptr.vmem [resolvable:$true] %s28_s27 }
  0x15   :  { %p193_p9 = scmp.lt.u32.totalorder %s189_s30, %s308_s1 }
  0x17   :  { %p195_p10 = pnand %p193_p9, %p190_p8 }
  0x19   :  { %198 = shalt.err (!%p195_p10)
}
  0x1a   :  { %s199_s8 = scalar_lea.vmem %s29_s27, 256  ;;  %p204_p12 = scmp.lt.s32.totalorder %s29_s27, %s29_s27 }
  0x1b   :  { %p200_p11 = scmp.ne.s32.totalorder %s29_s27, %s199_s8  ;;  %p205_p13 = scmp.lt.s32.totalorder %s199_s8, %s199_s8 }
  0x1d   :  { %p206_p0 = por %p205_p13, %p204_p12 }
  0x1f   :  { %p207_p1 = pnand %p206_p0, %p200_p11 }
  0x21   :  { %210 = shalt.err (!%p207_p1)
}
  0x22   :  { %34 = dma.hbm_to_vmem [thread:$0]  %s308_s1, 256, %s29_s27, [#allocation6], %s240_s22, %s240_s22, %s241_s23  }
  0x23   :  { %233 = dma.done.wait [#allocation3], 128  }
  0x24   :  { %234 = vsyncadd [#allocation3], 4294967168 }
  0x25   :  { %235 = dma.done.wait [#allocation6], 256  }
  0x26   :  { %236 = vsyncadd [#allocation6], 4294967040  ;;  %v243_v0 = vmov 0.0   ;;  %vm244_vm0 = vmmov 0   ;;  %v164_v1 = vld [vmem:[#allocation5] sm:$0xff]   ;;  %v165_v2 = vld [vmem:[#allocation5 + $0x8] sm:$0xff]  }
  0x27   :  { %147 = vmatprep.subr.bf16.mxu0 %v243_v0  ;;  %151 = vmatprep.mubr.msk.bf16.mxu0 %vm244_vm0, %v243_v0  ;;  %v166_v3 = vld [vmem:[#allocation2] sm:$0xff]   ;;  %vm74_vm1 = vcmask 261120   ;;  %s245_s1 = smov [#allocation7]  }
  0x28   :  { %148 = vmatpush3.bf16.msra.mxu0 %v164_v1  ;;  %v139_v4 = vld [vmem:[%s309_s2] ss:$0 sm:$0xff]  ;;  %s126_s12 = sshll.u32 %s245_s1, 4  ;;  %s127_s12 = int_to_ptr.vmem [resolvable:$true] %s126_s12 }
  0x29   :  { %149 = vmatprep.subr.bf16.mxu0 %v243_v0  ;;  %s211_s13 = scalar_lea.vmem %s127_s12, 256  ;;  %p216_p3 = scmp.lt.s32.totalorder %s127_s12, %s127_s12 }
  0x2a   :  { %p212_p2 = scmp.ne.s32.totalorder %s127_s12, %s211_s13  ;;  %p217_p4 = scmp.lt.s32.totalorder %s211_s13, %s211_s13 }
  0x2c   :  { %150 = vmatpush3.bf16.msra.mxu0 %v165_v2  ;;  %p218_p5 = por %p217_p4, %p216_p3 }
  0x2e   :  { %p219_p6 = pnand %p218_p5, %p212_p2 }
  0x2f   :  { %152 = vmatmul.mubr.msk.bf16.vlgmr.msra.gmra.mrb[0].mxu0 %vm74_vm1, %v166_v3 }
 0x102   :  { %v112_v5 = vpop.f32.mrb[0].mxu0 }
 0x103   :  { %v113_v6 = vadd.f32 %v139_v4, %v112_v5  ;;  %v153_v7 = vpop.f32.mrb[1].mxu0 }
 0x104   :  { %v115_v8 = vpop.f32.mrb[2].mxu0 }
 0x105   :  { %119 = vst [vmem:[#allocation7] sm:$0xff] %v113_v6  ;;  %v116_v9 = vadd.f32 %v139_v4, %v115_v8  ;;  %v154_v10 = vpop.f32.mrb[3].mxu0 }
 0x107   :  { %120 = vst [vmem:[#allocation7 + $0x8] sm:$0xff] %v116_v9 }
 0x108   :  { %222 = shalt.err (!%p219_p6)
}
 0x109   :  { %s223_s15 = scalar_lea.hbm %s310_s3, 256 }
 0x10a   :  { %p224_p7 = scmp.ne.s32.totalorder %s310_s3, %s223_s15  ;;  %p227_p8 = scmp.lt.u32.totalorder %s223_s15, %s310_s3 }
 0x10c   :  { %p229_p9 = pnand %p227_p8, %p224_p7 }
 0x10e   :  { %232 = shalt.err (!%p229_p9)
}
 0x10f   :  { %s246_s20 = smov 128   ;;  %s247_s21 = smov 8  }
 0x110   :  { %132 = dma.vmem_to_hbm [thread:$0]  %s127_s12, 256, %s310_s3, [#allocation4], %s246_s20, %s246_s20, %s247_s21  }
 0x111   :  { %237 = dma.done.wait [#allocation4], 256  }
 0x112   :  { %238 = vsyncadd [#allocation4], 4294967040 }
 0x113   :  { %136 = vsyncpa [#allocation3], 1 }
 0x114   :  { %137 = vsyncpa [#allocation6], 1 }
 0x115   :  { %138 = vsyncpa [#allocation4], 1 }

</bundles_post_ra>
